<compile_context>
chip_gen: v7x
topology: tpu7x:2x2x1
jax: 0.10.0
libtpu: 0.0.40
codegen_flags: <defaults>
</compile_context>

<pallas_src>
import functools

import jax
import jax.numpy as jnp
from jax.experimental import pallas as pl
from jax.experimental.pallas import tpu as pltpu


# ----------------------------------------------------------------------------
# Fused kernel: per-class softmax mass, per-class weighted-NLL numerator pieces,
# per-class valid counts.  Grid = (N, HW_pad // tile); accumulators are resident
# across the spatial ("arbitrary") axis, one slab per image on the "parallel" axis.
# ----------------------------------------------------------------------------
def _wce_fused_kernel(x_ref, t_ref, denom_ref, nll_ref, cnt_ref, *,
                      ignore_index, hw_true):
    j = pl.program_id(1)
    tile = x_ref.shape[-1]

    @pl.when(j == 0)
    def _():
        denom_ref[...] = jnp.zeros_like(denom_ref)
        nll_ref[...] = jnp.zeros_like(nll_ref)
        cnt_ref[...] = jnp.zeros_like(cnt_ref)

    x = x_ref[...].astype(jnp.float32)                      # (C, TM), cast in-vreg
    t = t_ref[...]                                          # (1, TM) int32

    # Mask lanes that fall beyond the true (unpadded) spatial extent.
    lane = jax.lax.broadcasted_iota(jnp.int32, (1, tile), 1)
    in_bounds = (j * tile + lane) < hw_true                 # (1, TM)

    # Shared numerically-stable softmax / log-sum-exp (single exp per element).
    m = jnp.max(x, axis=0, keepdims=True)                   # (1, TM)
    e = jnp.exp(x - m)                                      # (C, TM)
    sum_e = jnp.sum(e, axis=0, keepdims=True)               # (1, TM)
    lse = jnp.log(sum_e) + m                                # (1, TM)
    p = e / sum_e                                           # softmax over channels
    # (pl.reciprocal(sum_e, approx=True) is an option; exact divide kept for accuracy,
    #  the kernel is HBM-bound so the VPU divide is hidden anyway.)

    inb_f = in_bounds.astype(jnp.float32)
    denom_ref[...] += jnp.sum(p * inb_f, axis=1, keepdims=True)          # (C, 1)

    ch = jax.lax.broadcasted_iota(jnp.int32, x.shape, 0)    # (C, TM)
    valid = jnp.logical_and(t != ignore_index, in_bounds)   # (1, TM)
    onehot = jnp.logical_and(ch == t, valid).astype(jnp.float32)         # (C, TM)

    nll_ref[...] += jnp.sum(onehot * (lse - x), axis=1, keepdims=True)   # (C, 1)
    cnt_ref[...] += jnp.sum(onehot, axis=1, keepdims=True)               # (C, 1)


# ----------------------------------------------------------------------------
# Wrapper
# ----------------------------------------------------------------------------
def weighted_cross_entropy_loss(logits, target, *, ignore_index=-1, tile_m=2048):
    """Matches WeightedCrossEntropyLoss.forward(input, target) for NCHW inputs."""
    N, C, H, W = logits.shape
    HW = H * W
    M = N * HW

    # Lane tile: multiple of 128, clamped to the (rounded-up) spatial extent.
    tile_m = max(128, (tile_m // 128) * 128)
    tile = min(tile_m, pl.cdiv(HW, 128) * 128)
    n_j = pl.cdiv(HW, tile)
    hw_pad = n_j * tile

    # Free reshapes only — no transpose, no dtype copy (stream native dtype).
    x = logits.reshape(N, C, HW)
    t = target.reshape(N, 1, HW).astype(jnp.int32)
    if hw_pad != HW:
        x = jnp.pad(x, ((0, 0), (0, 0), (0, hw_pad - HW)))
        t = jnp.pad(t, ((0, 0), (0, 0), (0, hw_pad - HW)),
                    constant_values=ignore_index)

    kernel = functools.partial(_wce_fused_kernel,
                               ignore_index=ignore_index, hw_true=HW)

    denom_p, nll_p, cnt_p = pl.pallas_call(
        kernel,
        out_shape=(
            jax.ShapeDtypeStruct((N, C, 1), jnp.float32),
            jax.ShapeDtypeStruct((N, C, 1), jnp.float32),
            jax.ShapeDtypeStruct((N, C, 1), jnp.float32),
        ),
        grid_spec=pltpu.PrefetchScalarGridSpec(
            num_scalar_prefetch=0,
            grid=(N, n_j),
            in_specs=[
                pl.BlockSpec((pl.Squeezed(), C, tile), lambda n, j: (n, 0, j)),
                pl.BlockSpec((pl.Squeezed(), 1, tile), lambda n, j: (n, 0, j)),
            ],
            out_specs=(
                pl.BlockSpec((pl.Squeezed(), C, 1), lambda n, j: (n, 0, 0)),
                pl.BlockSpec((pl.Squeezed(), C, 1), lambda n, j: (n, 0, 0)),
                pl.BlockSpec((pl.Squeezed(), C, 1), lambda n, j: (n, 0, 0)),
            ),
        ),
        compiler_params=pltpu.CompilerParams(
            dimension_semantics=("parallel", "arbitrary"),
            vmem_limit_bytes=32 * 1024 * 1024,
        ),
    )(x, t)

    # Tiny C-sized finalization in plain JAX.
    denom = denom_p.sum(axis=0).reshape(C)                  # per-class softmax mass
    nll_c = nll_p.sum(axis=0).reshape(C)                    # per-class sum of NLL
    cnt_c = cnt_p.sum(axis=0).reshape(C)                    # per-class valid count

    weights = (jnp.float32(M) - denom) / denom              # (1-p).sum / p.sum
    lsum = jnp.sum(weights * nll_c)                         # == sum_m w[t_m] * nll_m
    wsum = jnp.sum(weights * cnt_c)                         # == sum_m w[t_m]
    return lsum / wsum                                      # F.cross_entropy 'mean'


# ----------------------------------------------------------------------------
# Pure-JAX reference (mirrors the PyTorch module) for a correctness check.
# ----------------------------------------------------------------------------
def _reference(logits, target, ignore_index=-1):
    N, C, H, W = logits.shape
    p = jax.nn.softmax(logits, axis=1)
    flat = jnp.transpose(p, (1, 0, 2, 3)).reshape(C, -1)
    denom = flat.sum(-1)
    w = (1.0 - flat).sum(-1) / denom
    logp = jax.nn.log_softmax(logits, axis=1)
    valid = target != ignore_index
    t_safe = jnp.where(valid, target, 0)
    lp_t = jnp.take_along_axis(logp, t_safe[:, None, :, :], axis=1)[:, 0]
    w_t = w[t_safe]
    vm = valid.astype(jnp.float32)
    return -(w_t * lp_t * vm).sum() / (w_t * vm).sum()


if __name__ == "__main__":
    key = jax.random.PRNGKey(0)
    k1, k2 = jax.random.split(key)

    N, C, H, W = 2, 4, 16, 16
    logits = jax.random.normal(k1, (N, C, H, W), dtype=jnp.float32)
    # targets in [-1, C): includes some ignore_index pixels.
    target = jax.random.randint(k2, (N, H, W), -1, C, dtype=jnp.int32)

    loss = weighted_cross_entropy_loss(logits, target, ignore_index=-1)
    loss = jax.block_until_ready(loss)

    ref = _reference(logits, target, ignore_index=-1)
    assert jnp.allclose(loss, ref, rtol=1e-4, atol=1e-5), (loss, ref)

    print("KERNEL_OK")
</pallas_src>

<mosaic_0001>
module attributes {stable_mosaic.version = 11 : i64} {
  func.func @_wce_fused_kernel(%arg0: i32, %arg1: i32, %arg2: memref<1x4x256xf32, #tpu.memory_space<vmem>>, %arg3: memref<1x1x256xi32, #tpu.memory_space<vmem>>, %arg4: memref<1x4x1xf32, #tpu.memory_space<vmem>>, %arg5: memref<1x4x1xf32, #tpu.memory_space<vmem>>, %arg6: memref<1x4x1xf32, #tpu.memory_space<vmem>>) attributes {dimension_semantics = [#tpu.dimension_semantics<parallel>, #tpu.dimension_semantics<arbitrary>], iteration_bounds = array<i64: 2, 1>, scalar_prefetch = 0 : i64, scratch_operands = 0 : i64, tpu.core_type = #tpu.core_type<tc>, window_params = [{transform_indices = @transform_0, window_bounds = array<i64: 1, 4, 256>}, {transform_indices = @transform_1, window_bounds = array<i64: 1, 1, 256>}, {transform_indices = @transform_2, window_bounds = array<i64: 1, 4, 1>}, {transform_indices = @transform_3, window_bounds = array<i64: 1, 4, 1>}, {transform_indices = @transform_4, window_bounds = array<i64: 1, 4, 1>}]} {
    %c0_i32 = arith.constant 0 : i32
    %0 = arith.cmpi eq, %arg1, %c0_i32 : i32
    %1 = arith.extui %0 : i1 to i32
    %c0_i32_0 = arith.constant 0 : i32
    %2 = arith.cmpi ne, %1, %c0_i32_0 : i32
    scf.if %2 {
      %cst_29 = arith.constant 0.000000e+00 : f32
      %65 = vector.broadcast %cst_29 : f32 to vector<4x1xf32>
      %c0_30 = arith.constant 0 : index
      %c0_31 = arith.constant 0 : index
      %c0_32 = arith.constant 0 : index
      %66 = vector.load %arg4[%c0_30, %c0_31, %c0_32] : memref<1x4x1xf32, #tpu.memory_space<vmem>>, vector<1x4x1xf32>
      %67 = vector.shape_cast %66 : vector<1x4x1xf32> to vector<4x1xf32>
      %68 = vector.shape_cast %65 : vector<4x1xf32> to vector<1x4x1xf32>
      tpu.vector_store %arg4[%c0_30, %c0_31, %c0_32], %68 {strides = array<i32>} : memref<1x4x1xf32, #tpu.memory_space<vmem>>, vector<1x4x1xf32>,
      %cst_33 = arith.constant 0.000000e+00 : f32
      %69 = vector.broadcast %cst_33 : f32 to vector<4x1xf32>
      %c0_34 = arith.constant 0 : index
      %c0_35 = arith.constant 0 : index
      %c0_36 = arith.constant 0 : index
      %70 = vector.load %arg5[%c0_34, %c0_35, %c0_36] : memref<1x4x1xf32, #tpu.memory_space<vmem>>, vector<1x4x1xf32>
      %71 = vector.shape_cast %70 : vector<1x4x1xf32> to vector<4x1xf32>
      %72 = vector.shape_cast %69 : vector<4x1xf32> to vector<1x4x1xf32>
      tpu.vector_store %arg5[%c0_34, %c0_35, %c0_36], %72 {strides = array<i32>} : memref<1x4x1xf32, #tpu.memory_space<vmem>>, vector<1x4x1xf32>,
      %cst_37 = arith.constant 0.000000e+00 : f32
      %73 = vector.broadcast %cst_37 : f32 to vector<4x1xf32>
      %c0_38 = arith.constant 0 : index
      %c0_39 = arith.constant 0 : index
      %c0_40 = arith.constant 0 : index
      %74 = vector.load %arg6[%c0_38, %c0_39, %c0_40] : memref<1x4x1xf32, #tpu.memory_space<vmem>>, vector<1x4x1xf32>
      %75 = vector.shape_cast %74 : vector<1x4x1xf32> to vector<4x1xf32>
      %76 = vector.shape_cast %73 : vector<4x1xf32> to vector<1x4x1xf32>
      tpu.vector_store %arg6[%c0_38, %c0_39, %c0_40], %76 {strides = array<i32>} : memref<1x4x1xf32, #tpu.memory_space<vmem>>, vector<1x4x1xf32>,
    } else {
    }
    %c0 = arith.constant 0 : index
    %c0_1 = arith.constant 0 : index
    %c0_2 = arith.constant 0 : index
    %3 = vector.load %arg2[%c0, %c0_1, %c0_2] : memref<1x4x256xf32, #tpu.memory_space<vmem>>, vector<1x4x256xf32>
    %4 = vector.shape_cast %3 : vector<1x4x256xf32> to vector<4x256xf32>
    %c0_3 = arith.constant 0 : index
    %c0_4 = arith.constant 0 : index
    %c0_5 = arith.constant 0 : index
    %5 = vector.load %arg3[%c0_3, %c0_4, %c0_5] : memref<1x1x256xi32, #tpu.memory_space<vmem>>, vector<1x1x256xi32>
    %6 = vector.shape_cast %5 : vector<1x1x256xi32> to vector<1x256xi32>
    %7 = tpu.iota {dimensions = array<i32: 1>} : vector<1x256xi32>
    %c256_i32 = arith.constant 256 : i32
    %8 = arith.muli %arg1, %c256_i32 : i32
    %9 = vector.broadcast %8 : i32 to vector<1x256xi32>
    %10 = arith.addi %9, %7 : vector<1x256xi32>
    %c256_i32_6 = arith.constant 256 : i32
    %11 = vector.broadcast %c256_i32_6 : i32 to vector<1x256xi32>
    %12 = arith.cmpi slt, %10, %11 : vector<1x256xi32>
    %cst = arith.constant dense<0xFF800000> : vector<256xf32>
    %13 = vector.multi_reduction <maximumf>, %4, %cst [0] : vector<4x256xf32> to vector<256xf32>
    %14 = vector.shape_cast %13 : vector<256xf32> to vector<1x256xf32>
    %15 = vector.broadcast %14 : vector<1x256xf32> to vector<4x256xf32>
    %16 = arith.subf %4, %15 : vector<4x256xf32>
    %17 = math.exp %16 : vector<4x256xf32>
    %cst_7 = arith.constant dense<0.000000e+00> : vector<256xf32>
    %18 = vector.multi_reduction <add>, %17, %cst_7 [0] : vector<4x256xf32> to vector<256xf32>
    %19 = vector.shape_cast %18 : vector<256xf32> to vector<1x256xf32>
    %20 = math.log %19 : vector<1x256xf32>
    %21 = arith.addf %20, %14 : vector<1x256xf32>
    %22 = vector.broadcast %19 : vector<1x256xf32> to vector<4x256xf32>
    %23 = arith.divf %17, %22 : vector<4x256xf32>
    %24 = arith.extui %12 : vector<1x256xi1> to vector<1x256xi32>
    %25 = arith.sitofp %24 : vector<1x256xi32> to vector<1x256xf32>
    %c0_8 = arith.constant 0 : index
    %c0_9 = arith.constant 0 : index
    %c0_10 = arith.constant 0 : index
    %26 = vector.load %arg4[%c0_8, %c0_9, %c0_10] : memref<1x4x1xf32, #tpu.memory_space<vmem>>, vector<1x4x1xf32>
    %27 = vector.shape_cast %26 : vector<1x4x1xf32> to vector<4x1xf32>
    %28 = vector.broadcast %25 : vector<1x256xf32> to vector<4x256xf32>
    %29 = arith.mulf %23, %28 : vector<4x256xf32>
    %cst_11 = arith.constant dense<0.000000e+00> : vector<4xf32>
    %30 = vector.multi_reduction <add>, %29, %cst_11 [1] : vector<4x256xf32> to vector<4xf32>
    %31 = vector.shape_cast %30 : vector<4xf32> to vector<4x1xf32>
    %32 = arith.addf %27, %31 : vector<4x1xf32>
    %c0_12 = arith.constant 0 : index
    %c0_13 = arith.constant 0 : index
    %c0_14 = arith.constant 0 : index
    %33 = vector.load %arg4[%c0_12, %c0_13, %c0_14] : memref<1x4x1xf32, #tpu.memory_space<vmem>>, vector<1x4x1xf32>
    %34 = vector.shape_cast %33 : vector<1x4x1xf32> to vector<4x1xf32>
    %35 = vector.shape_cast %32 : vector<4x1xf32> to vector<1x4x1xf32>
    tpu.vector_store %arg4[%c0_12, %c0_13, %c0_14], %35 {strides = array<i32>} : memref<1x4x1xf32, #tpu.memory_space<vmem>>, vector<1x4x1xf32>,
    %36 = tpu.iota {dimensions = array<i32: 0>} : vector<4x256xi32>
    %c-1_i32 = arith.constant -1 : i32
    %37 = vector.broadcast %c-1_i32 : i32 to vector<1x256xi32>
    %38 = arith.cmpi ne, %6, %37 : vector<1x256xi32>
    %39 = arith.andi %38, %12 : vector<1x256xi1>
    %40 = vector.broadcast %6 : vector<1x256xi32> to vector<4x256xi32>
    %41 = arith.cmpi eq, %36, %40 : vector<4x256xi32>
    %42 = vector.broadcast %39 : vector<1x256xi1> to vector<4x256xi1>
    %43 = arith.andi %41, %42 : vector<4x256xi1>
    %44 = arith.extui %43 : vector<4x256xi1> to vector<4x256xi32>
    %45 = arith.sitofp %44 : vector<4x256xi32> to vector<4x256xf32>
    %c0_15 = arith.constant 0 : index
    %c0_16 = arith.constant 0 : index
    %c0_17 = arith.constant 0 : index
    %46 = vector.load %arg5[%c0_15, %c0_16, %c0_17] : memref<1x4x1xf32, #tpu.memory_space<vmem>>, vector<1x4x1xf32>
    %47 = vector.shape_cast %46 : vector<1x4x1xf32> to vector<4x1xf32>
    %48 = vector.broadcast %21 : vector<1x256xf32> to vector<4x256xf32>
    %49 = arith.subf %48, %4 : vector<4x256xf32>
    %50 = arith.mulf %45, %49 : vector<4x256xf32>
    %cst_18 = arith.constant dense<0.000000e+00> : vector<4xf32>
    %51 = vector.multi_reduction <add>, %50, %cst_18 [1] : vector<4x256xf32> to vector<4xf32>
    %52 = vector.shape_cast %51 : vector<4xf32> to vector<4x1xf32>
    %53 = arith.addf %47, %52 : vector<4x1xf32>
    %c0_19 = arith.constant 0 : index
    %c0_20 = arith.constant 0 : index
    %c0_21 = arith.constant 0 : index
    %54 = vector.load %arg5[%c0_19, %c0_20, %c0_21] : memref<1x4x1xf32, #tpu.memory_space<vmem>>, vector<1x4x1xf32>
    %55 = vector.shape_cast %54 : vector<1x4x1xf32> to vector<4x1xf32>
    %56 = vector.shape_cast %53 : vector<4x1xf32> to vector<1x4x1xf32>
    tpu.vector_store %arg5[%c0_19, %c0_20, %c0_21], %56 {strides = array<i32>} : memref<1x4x1xf32, #tpu.memory_space<vmem>>, vector<1x4x1xf32>,
    %c0_22 = arith.constant 0 : index
    %c0_23 = arith.constant 0 : index
    %c0_24 = arith.constant 0 : index
    %57 = vector.load %arg6[%c0_22, %c0_23, %c0_24] : memref<1x4x1xf32, #tpu.memory_space<vmem>>, vector<1x4x1xf32>
    %58 = vector.shape_cast %57 : vector<1x4x1xf32> to vector<4x1xf32>
    %cst_25 = arith.constant dense<0.000000e+00> : vector<4xf32>
    %59 = vector.multi_reduction <add>, %45, %cst_25 [1] : vector<4x256xf32> to vector<4xf32>
    %60 = vector.shape_cast %59 : vector<4xf32> to vector<4x1xf32>
    %61 = arith.addf %58, %60 : vector<4x1xf32>
    %c0_26 = arith.constant 0 : index
    %c0_27 = arith.constant 0 : index
    %c0_28 = arith.constant 0 : index
    %62 = vector.load %arg6[%c0_26, %c0_27, %c0_28] : memref<1x4x1xf32, #tpu.memory_space<vmem>>, vector<1x4x1xf32>
    %63 = vector.shape_cast %62 : vector<1x4x1xf32> to vector<4x1xf32>
    %64 = vector.shape_cast %61 : vector<4x1xf32> to vector<1x4x1xf32>
    tpu.vector_store %arg6[%c0_26, %c0_27, %c0_28], %64 {strides = array<i32>} : memref<1x4x1xf32, #tpu.memory_space<vmem>>, vector<1x4x1xf32>,
    return
  }
  func.func @transform_0(%arg0: i32, %arg1: i32) -> (i32, i32, i32) {
    %c0_i32 = arith.constant 0 : i32
    %c0_i32_0 = arith.constant 0 : i32
    return %arg0, %c0_i32, %arg1 : i32, i32, i32
  }
  func.func @transform_1(%arg0: i32, %arg1: i32) -> (i32, i32, i32) {
    %c0_i32 = arith.constant 0 : i32
    %c0_i32_0 = arith.constant 0 : i32
    return %arg0, %c0_i32, %arg1 : i32, i32, i32
  }
  func.func @transform_2(%arg0: i32, %arg1: i32) -> (i32, i32, i32) {
    %c0_i32 = arith.constant 0 : i32
    %c0_i32_0 = arith.constant 0 : i32
    %c0_i32_1 = arith.constant 0 : i32
    return %arg0, %c0_i32, %c0_i32_0 : i32, i32, i32
  }
  func.func @transform_3(%arg0: i32, %arg1: i32) -> (i32, i32, i32) {
    %c0_i32 = arith.constant 0 : i32
    %c0_i32_0 = arith.constant 0 : i32
    %c0_i32_1 = arith.constant 0 : i32
    return %arg0, %c0_i32, %c0_i32_0 : i32, i32, i32
  }
  func.func @transform_4(%arg0: i32, %arg1: i32) -> (i32, i32, i32) {
    %c0_i32 = arith.constant 0 : i32
    %c0_i32_0 = arith.constant 0 : i32
    %c0_i32_1 = arith.constant 0 : i32
    return %arg0, %c0_i32, %c0_i32_0 : i32, i32, i32
  }
}

</mosaic_0001>

<bundles_post_ra>
// kernel: tpu_custom_call.1
= control target key start
LH: loop header
LB: loop body
LE: loop exit
PB: predicated region body
PF: predicated region fallthrough
CT: control target
= control target key end

     0   :  { %10 = vsyncpa [#allocation3], 0  ;;  %s1078_s0 = inlined_call_operand.hbm [shape: f32[2,4,256], index: 0, kind: input, shape index: {}]   ;;  %s1079_s1 = inlined_call_operand.hbm [shape: s32[2,1,256], index: 1, kind: input, shape index: {}]   ;;  %s1080_s2 = inlined_call_operand.vmem [shape: f32[2,4,1], index: 2, kind: output, shape index: {0}]   ;;  %s1081_s3 = inlined_call_operand.vmem [shape: f32[2,4,1], index: 3, kind: output, shape index: {1}]   ;;  %s1082_s4 = inlined_call_operand.vmem [shape: f32[2,4,1], index: 4, kind: output, shape index: {2}]  }
   0x1   :  { %12 = vsyncpa [#allocation3 + $0x1], 0 }
   0x2   :  { %13 = vsyncpa [#allocation5], 0 }
   0x3   :  { %15 = vsyncpa [#allocation5 + $0x1], 0  ;;  %s864_s15 = smov 0   ;;  %s866_s16 = smov 0  }
   0x4   :  { %s868_s17 = smov 0   ;;  %s870_s18 = smov 0  }
   0x5   :  { %s872_s19 = smov 0   ;;  %s874_s20 = smov 0  }
   0x6 LB: > { %s620_s21 = sadd.s32 4294967295, %s830_s20   ;;  %s33_s22 = sadd.s32 1, %s826_s19  ;;  %s830_s20 = sphi %s874_s20, %s21_s20   ;;  %s826_s19 = sphi %s872_s19, %s1096_s19   ;;  %s822_s18 = sphi %s870_s18, %s1095_s18   ;;  %s818_s17 = sphi %s868_s17, %s1094_s17   ;;  %s814_s16 = sphi %s866_s16, %s1093_s16   ;;  %s810_s15 = sphi %s864_s15, %s1092_s15  }
   0x7   : > { %p35_p0 = scmp.ge.s32.totalorder %s33_s22, 2  ;;  %s42_s23 = sadd.s32 1, %s818_s17 }
   0x8   : > { %p49_p1 = scmp.ne.s32.totalorder %s818_s17, %s814_s16  ;;  %p50_p2 = scmp.eq.s32.totalorder %s830_s20, 0 }
   0x9   : > { %s1098_s22 = smov (%p35_p0, %s33_s22), 0  ;;  %p55_p4 = scmp.ne.s32.totalorder %s814_s16, %s810_s15 }
   0xa   : > { %p900_p3 = por %p50_p2, %p49_p1  ;;  %s37_s25 = ssub.s32 %s826_s19, %s1098_s22 }
   0xb   : > { %p56_p5 = scmp.eq.s32.totalorder %s620_s21, 0  ;;  %p40_p6 = scmp.eq.s32.totalorder %s37_s25, 0 }
   0xc   : > { %p653_p8 = scmp.lt.s32.totalorder %s830_s20, 2  ;;  %s916_s28 = sand.u32 1, %s818_s17  }
   0xd   : > { %p907_p7 = por %p56_p5, %p55_p4  ;;  %s640_s29 = sshll.u32 %s826_s19, 7 }
   0xe   : > { %s913_s27 = scalar_select %p40_p6, %s818_s17, %s42_s23  }
   0xf   : > { %s1085_s26 = scalar_select %p907_p7, 1, 0 }
  0x10   : > { %s624_s30 = sshll.u32 %s916_s28, 3  ;;  %s923_s7 = scalar_lea.hbm %s1078_s0, %s640_s29 }
  0x11   : > { %s189_s8 = scalar_lea.vmem [#allocation2], %s624_s30  ;;  %p927_p9 = pnand %p653_p8, %p900_p3 }
  0x12   : > { %s199_s9 = sshll.u32 %s189_s8, 4  ;;  %s186_s11 = scalar_lea.sflag [#allocation3], %s916_s28  ;;  %s931_s9 = int_to_ptr.vmem [resolvable:$true] %s199_s9 }
  0x13   : > { %s716_s12 = scalar_lea.hbm %s923_s7, 128  ;;  %p718_p13 = pneg %p927_p9 }
  0x14   : > { %p717_p12 = scmp.ne.s32.totalorder %s923_s7, %s716_s12  ;;  %s721_s15 = scalar_lea.hbm %s1078_s0, 256 }
  0x15   : > { %p722_p2 = scmp.lt.u32.totalorder %s923_s7, %s1078_s0  ;;  %p723_p3 = scmp.lt.u32.totalorder %s721_s15, %s716_s12 }
  0x16   : > { %p719_p0 = pnand %p718_p13, %p717_p12  ;;  %p725_p5 = scmp.lt.u32.totalorder %s716_s12, %s923_s7 }
  0x17   : > { %p724_p4 = por %p723_p3, %p722_p2 }
  0x18   : > { %p720_p1 = pneg %p719_p0 }
  0x19   : > { %p726_p6 = por %p725_p5, %p724_p4 }
  0x1b   : > { %p727_p8 = pnand %p726_p6, %p720_p1 }
  0x1d   : > { %730 = shalt.err (!%p727_p8)
}
  0x1e   : > { %s731_s24 = scalar_lea.vmem %s931_s9, 128  ;;  %s832_s25 = smov [#allocation2]  }
  0x1f   : > { %p732_p12 = scmp.ne.s32.totalorder %s931_s9, %s731_s24  ;;  %s736_s29 = sshll.u32 %s832_s25, 4  ;;  %s737_s29 = int_to_ptr.vmem [resolvable:$false] %s736_s29 }
  0x20   : > { %s738_s30 = scalar_lea.vmem %s737_s29, 256  ;;  %p739_p11 = scmp.lt.s32.totalorder %s931_s9, %s737_s29 }
  0x21   : > { %p734_p0 = pnand %p732_p12, %p718_p13  ;;  %p740_p2 = scmp.lt.s32.totalorder %s738_s30, %s731_s24 }
  0x23   : > { %p735_p10 = pneg %p734_p0  ;;  %p741_p3 = por %p740_p2, %p739_p11 }
  0x25   : > { %p742_p4 = pnand %p741_p3, %p735_p10 }
  0x27   : > { %745 = shalt.err (!%p742_p4)
}
  0x28   : > { %649 = dma.hbm_to_vmem [thread:$0]  (!%p927_p9), %s923_s7, 128, %s931_s9, %s186_s11  }
  0x29   : > { %p1087_p1 = scmp.lt.s32.totalorder %s830_s20, 3  ;;  %p1088_p5 = scmp.ge.s32.totalorder %s830_s20, 1 }
  0x2a   : > { %s627_s6 = sshll.u32 %s916_s28, 1  ;;  %s641_s8 = sshll.u32 %s826_s19, 5 }
  0x2b   : > { %p965_p6 = pnand %p1088_p5, %p1087_p1  ;;  %s974_s14 = scalar_lea.hbm %s1079_s1, %s641_s8 }
  0x2c   : > { %s210_s15 = scalar_lea.vmem [#allocation4], %s627_s6  ;;  %s207_s7 = scalar_lea.sflag [#allocation5], %s916_s28 }
  0x2d   : > { %s1089_s5 = scalar_select %p965_p6, 1, 0 }
  0x2e   : > { %s220_s21 = sshll.u32 %s210_s15, 4  ;;  %s746_s9 = scalar_lea.hbm %s974_s14, 32  ;;  %s221_s21 = int_to_ptr.vmem [resolvable:$true] %s220_s21 }
  0x2f   : > { %p747_p10 = scmp.ne.s32.totalorder %s974_s14, %s746_s9  ;;  %s751_s24 = scalar_lea.hbm %s1079_s1, 64 }
  0x30   : > { %p752_p12 = scmp.lt.u32.totalorder %s974_s14, %s1079_s1  ;;  %p753_p0 = scmp.lt.u32.totalorder %s751_s24, %s746_s9 }
  0x31   : > { %p749_p11 = pnand %p747_p10, %p718_p13  ;;  %p755_p3 = scmp.lt.u32.totalorder %s746_s9, %s974_s14 }
  0x32   : > { %p754_p2 = por %p753_p0, %p752_p12 }
  0x33   : > { %p750_p8 = pneg %p749_p11 }
  0x34   : > { %p756_p4 = por %p755_p3, %p754_p2 }
  0x36   : > { %p757_p1 = pnand %p756_p4, %p750_p8 }
  0x38   : > { %760 = shalt.err (!%p757_p1)
}
  0x39   : > { %s761_s28 = scalar_lea.vmem %s221_s21, 32  ;;  %s833_s30 = smov [#allocation4]  }
  0x3a   : > { %p762_p5 = scmp.ne.s32.totalorder %s221_s21, %s761_s28  ;;  %s766_s6 = sshll.u32 %s833_s30, 4  ;;  %s767_s6 = int_to_ptr.vmem [resolvable:$false] %s766_s6 }
  0x3b   : > { %s768_s8 = scalar_lea.vmem %s767_s6, 64  ;;  %p769_p7 = scmp.lt.s32.totalorder %s221_s21, %s767_s6 }
  0x3c   : > { %p764_p10 = pnand %p762_p5, %p718_p13  ;;  %p770_p6 = scmp.lt.s32.totalorder %s768_s8, %s761_s28 }
  0x3e   : > { %p765_p11 = pneg %p764_p10  ;;  %p771_p0 = por %p770_p6, %p769_p7 }
  0x40   : > { %p772_p12 = pnand %p771_p0, %p765_p11 }
  0x42   : > { %775 = shalt.err (!%p772_p12)
}
  0x43   : > { %652 = dma.hbm_to_vmem [thread:$0]  (!%p927_p9), %s974_s14, 32, %s221_s21, %s207_s7  }
  0x44   : > { %p1090_p8 = scmp.ne.s32.totalorder %s1089_s5, 0 }
  0x45   : > { %s231_s12 = sand.u32 (!%p1090_p8), 1, %s814_s16   ;;  %p1091_p13 = scmp.ne.s32.totalorder (!%p1090_p8), %s1085_s26, 0 }
  0x46   : > { %229 = sbr.rel (%p1090_p8) target bundleno = 301 (0x12d), region = 28  ;;  %s631_s13 = sshll.u32 (!%p1090_p8), %s231_s12, 3 }
  0x47   : > { %s232_s15 = scalar_lea.sflag (!%p1090_p8), [#allocation3], %s231_s12  ;;  %s235_s9 = scalar_lea.vmem (!%p1090_p8), [#allocation2], %s631_s13 }
  0x4d   : > { %801 = dma.done.wait (%p1091_p13), %s232_s15, 128  }
  0x4e   : > { %803 = vsyncadd (%p1091_p13), %s232_s15, 4294967168  ;;  %s632_s11 = sshll.u32 %s231_s12, 1  ;;  %s241_s23 = scalar_lea.sflag [#allocation5], %s231_s12 }
  0x4f   : > { %s244_s10 = scalar_lea.vmem [#allocation4], %s632_s11 }
  0x50   : > { %805 = dma.done.wait (%p1091_p13), %s241_s23, 32  }
  0x51   : > { %807 = vsyncadd (%p1091_p13), %s241_s23, 4294967264  ;;  %v389_v0 = vlaneseq  ;;  %p283_p7 = scmp.lt.s32.totalorder %s822_s18, 1  ;;  %v834_v2 = vmov 1966171168   ;;  %vm299_vm0 = vcmask 3072   ;;  %v835_v4 = vmov 1  }
  0x52   : > { %v394_v3 = vunpack.c.l.s4 %v834_v2  ;;  %v392_v5 = vcombine.low %v835_v4, %v835_v4  ;;  %vm317_vm1 = vcmask 1043456   ;;  %v836_v9 = vmov 0.0   ;;  %v1020_v10 = vld [vmem:[%s235_s9] sm:$0xff]  ;;  %v304_v11 = vld [vmem:[%s244_s10] sm:$0x3] }
  0x53   : > { %v390_v1 = vshrl.u32 %v389_v0, 7  ;;  %s1100_s18 = smov (!%p283_p7, %s822_s18), 1  ;;  %v1024_v12 = vcombine.high %v1020_v10, %v1020_v10  ;;  %v318_v13 = vsel %vm317_vm1, %v1020_v10, -inf  ;;  %vm391_vm2 = vcmp.ne.s32.totalorder %v304_v11, 4294967295 }
  0x54   : > { %v395_v6 = vunpack.c.0.s8 %v394_v3  ;;  %s1009_s5 = sshll.u32 %s1100_s18, 2  ;;  %v319_v16 = vrot.slane %v318_v13, 4  ;;  %v837_v25 = vmov 0   ;;  %v838_v0 = vmov 1.0  }
  0x55   : > { %s1015_s26 = scalar_lea.vmem %s1080_s2, %s1009_s5  ;;  %v411_v8 = vsub.s32 0, %v390_v1  ;;  %v415_v15 = vsub.s32 1, %v390_v1  ;;  %v325_v17 = vsel %vm317_vm1, %v1024_v12, -inf  ;;  %s294_s24 = scalar_lea.vmem %s1082_s4, %s1009_s5 }
  0x56   : > { %v398_v7 = vsub.s32 %v395_v6, %v390_v1  ;;  %300 = vst.msk [vmem:[%s1015_s26] sm:$0xf] %vm299_vm0, %v836_v9  ;;  %v320_v20 = vmax.f32 %v318_v13, %v319_v16  ;;  %v326_v21 = vrot.slane %v325_v17, 4  ;;  %s290_s28 = scalar_lea.vmem %s1081_s3, %s1009_s5  ;;  %302 = vst.msk [vmem:[%s294_s24] sm:$0xf] %vm299_vm0, %v836_v9 }
  0x57   : > { %v412_v19 = vrot.slane %v304_v11, %v411_v8  ;;  %v416_v22 = vrot.slane %v304_v11, %v415_v15  ;;  %301 = vst.msk [vmem:[%s290_s28] sm:$0xf] %vm299_vm0, %v836_v9 }
  0x58   : > { %v399_v14 = vrot.slane %v392_v5, %v398_v7  ;;  %v321_v23 = vrot.slane %v320_v20, 2  ;;  %v327_v24 = vmax.f32 %v325_v17, %v326_v21 }
  0x59   : > { %vm417_vm5 = vcmp.eq.s32.totalorder %v390_v1, %v412_v19  ;;  %vm418_vm6 = vcmp.eq.s32.totalorder %v390_v1, %v416_v22  ;;  %v375_v1 = vcombine.low %v838_v0, %v838_v0 }
  0x5a   : > { %v406_v18 = vrot.slane %v399_v14, %v398_v7  ;;  %v322_v27 = vmax.f32 %v320_v20, %v321_v23  ;;  %v328_v28 = vrot.slane %v327_v24, 2 }
  0x5c   : > { %vm407_vm3 = vcmp.ne.s32.totalorder %v406_v18, 0  ;;  %v323_v31 = vrot.slane %v322_v27, 1  ;;  %v329_v32 = vmax.f32 %v327_v24, %v328_v28 }
  0x5d   : > { %vm408_vm4 = vmand %vm391_vm2, %vm407_vm3  ;;  %v372_v23 = vld [vmem:[%s1015_s26] sm:$0xf] }
  0x5e   : > { %v419_v26 = vsel %vm408_vm4, 1, %v837_v25  ;;  %v324_v33 = vmax.f32 %v322_v27, %v323_v31  ;;  %v330_v34 = vrot.slane %v329_v32, 1 }
  0x5f   : > { %v423_v29 = vrot.slane %v419_v26, %v411_v8  ;;  %v427_v30 = vrot.slane %v419_v26, %v415_v15  ;;  %v436_v26 = vld [vmem:[%s290_s28] sm:$0xf] }
  0x60   : > { %v331_v38 = vmax.f32 %v329_v32, %v330_v34 }
  0x61   : > { %vm428_vm7 = vcmp.eq.s32.totalorder %v423_v29, 1  ;;  %vm429_vm8 = vcmp.eq.s32.totalorder %v427_v30, 1 }
  0x62   : > { %vm430_vm9 = vmand %vm417_vm5, %vm428_vm7  ;;  %v334_v41 = vcombine.low %v324_v33, %v331_v38 }
  0x63   : > { %vm431_vm10 = vmand %vm418_vm6, %vm429_vm8  ;;  %v636_v35 = vsel %vm430_vm9, 1.0, %v836_v9 }
  0x64   : > { %v637_v36 = vsel %vm431_vm10, 1.0, %v836_v9  ;;  %v449_v37 = vsel %vm317_vm1, %v636_v35, 0.0  ;;  %v336_v42 = vsub.f32 %v1020_v10, %v334_v41 }
  0x65   : > { %v450_v39 = vsel %vm317_vm1, %v637_v36, 0.0 }
  0x66   : > { %v451_v40 = vadd.f32 %v450_v39, %v449_v37  ;;  %v337_v43 = vmul.f32 1.442695, %v336_v42 }
  0x68   : > { %452 = vadd.xlane.f32.xlu1 %v451_v40  ;;  %708 = vpow2.f32 %v337_v43 }
  0x72   : > { %v709_v44 = vpop.eup %708 }
  0x73   : > { %v340_v45 = vcombine.high %v709_v44, %v709_v44  ;;  %v342_v46 = vsel %vm317_vm1, %v709_v44, 0.0 }
  0x74   : > { %v343_v47 = vrot.slane %v342_v46, 4 }
  0x75   : > { %v349_v48 = vsel %vm317_vm1, %v340_v45, 0.0 }
  0x76   : > { %v344_v49 = vadd.f32 %v343_v47, %v342_v46  ;;  %v350_v50 = vrot.slane %v349_v48, 4 }
  0x78   : > { %v345_v51 = vrot.slane %v344_v49, 2  ;;  %v351_v52 = vadd.f32 %v350_v50, %v349_v48 }
  0x7a   : > { %v346_v53 = vadd.f32 %v345_v51, %v344_v49  ;;  %v352_v54 = vrot.slane %v351_v52, 2 }
  0x7c   : > { %v347_v55 = vrot.slane %v346_v53, 1  ;;  %v353_v56 = vadd.f32 %v352_v54, %v351_v52 }
  0x7e   : > { %v348_v57 = vadd.f32 %v347_v55, %v346_v53  ;;  %v354_v58 = vrot.slane %v353_v56, 1 }
  0x80   : > { %v355_v59 = vadd.f32 %v354_v58, %v353_v56  ;;  %710 = vlog2.f32 %v348_v57 }
  0x82   : > { %v364_v60 = vcombine.low %v348_v57, %v355_v59  ;;  %712 = vlog2.f32 %v355_v59 }
  0x84   : > { %714 = vrcp.f32 %v364_v60 }
  0x8a   : > { %v711_v61 = vpop.eup %710 }
  0x8b   : > { %v357_v62 = vmul.f32 0.6931472, %v711_v61 }
  0x8c   : > { %v713_v63 = vpop.eup %712 }
  0x8d   : > { %v359_v2 = vmul.f32 0.6931472, %v713_v63  ;;  %v360_v3 = vadd.f32 %v357_v62, %v324_v33 }
  0x8e   : > { %v715_v4 = vpop.eup %714 }
  0x8f   : > { %v367_v5 = vmul.f32 %v715_v4, %v709_v44  ;;  %v361_v6 = vadd.f32 %v359_v2, %v331_v38  ;;  %v437_v7 = vsub.f32 %v360_v3, %v1020_v10  ;;  %v448_v10 = vld [vmem:[%s294_s24] sm:$0xf] }
  0x91   : > { %v377_v8 = vmul.f32 %v375_v1, %v367_v5  ;;  %v438_v11 = vsub.f32 %v361_v6, %v1024_v12  ;;  %v439_v13 = vmul.f32 %v636_v35, %v437_v7 }
  0x93   : > { %v379_v14 = vcombine.high %v377_v8, %v377_v8  ;;  %v381_v15 = vsel %vm317_vm1, %v377_v8, 0.0  ;;  %v440_v16 = vmul.f32 %v637_v36, %v438_v11  ;;  %v441_v17 = vsel %vm317_vm1, %v439_v13, 0.0 }
  0x95   : > { %v382_v18 = vsel %vm317_vm1, %v379_v14, 0.0  ;;  %v442_v19 = vsel %vm317_vm1, %v440_v16, 0.0 }
  0x96   : > { %v383_v20 = vadd.f32 %v382_v18, %v381_v15  ;;  %v443_v21 = vadd.f32 %v442_v19, %v441_v17 }
  0x98   : > { %384 = vadd.xlane.f32.xlu0 %v383_v20 }
  0x9c   : > { %444 = vadd.xlane.f32.xlu0 %v443_v21 }
  0xf5   : > { %v453_v12 = vpop.xlane.xlu1 %452 }
  0xf6   : > { %v454_v22 = vadd.f32 %v453_v12, %v448_v10 }
  0xf8   : > { %455 = vst.msk [vmem:[%s294_s24] sm:$0xf] %vm299_vm0, %v454_v22 }
 0x125   : > { %v385_v24 = vpop.xlane.xlu0 %384 }
 0x126   : > { %v386_v25 = vadd.f32 %v385_v24, %v372_v23 }
 0x128   : > { %388 = vst.msk [vmem:[%s1015_s26] sm:$0xf] %vm299_vm0, %v386_v25 }
 0x129   : > { %v445_v27 = vpop.xlane.xlu0 %444 }
 0x12a   : > { %v446_v28 = vadd.f32 %v445_v27, %v436_v26 }
 0x12c   : > { %447 = vst.msk [vmem:[%s290_s28] sm:$0xf] %vm299_vm0, %v446_v28 }
 0x12d PF: > { %s21_s20 = sadd.s32 1, %s830_s20   ;;  %s1092_s15 = smov %s814_s16 }
 0x12e   : > { %p18_p9 = scmp.ge.s32.totalorder %s21_s20, 4   ;;  %s1093_s16 = smov %s818_s17 }
 0x12f   : > { %s1094_s17 = smov %s913_s27  ;;  %s1095_s18 = smov %s826_s19 }
 0x130   : > { %s1096_s19 = smov %s1098_s22  ;;  %20 = sbr.rel (!%p18_p9) target bundleno = 6 (0x6), region = 109 }
 0x137   :  { %503 = vsyncpa [#allocation3], 1 }
 0x138   :  { %505 = vsyncpa [#allocation3 + $0x1], 1 }
 0x139   :  { %506 = vsyncpa [#allocation5], 1 }
 0x13a   :  { %508 = vsyncpa [#allocation5 + $0x1], 1 }

</bundles_post_ra>
